<compile_context>
chip_gen: v7x
topology: tpu7x:2x2x1
jax: 0.10.0
libtpu: 0.0.40
codegen_flags: <defaults>
</compile_context>

<pallas_src>
import math
import jax
import jax.numpy as jnp
from jax.experimental import pallas as pl
from jax.experimental.pallas import tpu as pltpu


def _cdiv(a, b):
    return (a + b - 1) // b


def _round_up(n, m):
    return ((n + m - 1) // m) * m


def _default_tile_b():
    # Generation-aware default: 4096 rows when >=128 MiB VMEM (v5e/v6e), else 2048 (v7x: 64 MiB/TC).
    try:
        vmem = int(getattr(pltpu.get_tpu_info(), "vmem_capacity_bytes", 64 << 20))
    except Exception:
        vmem = 64 << 20
    return 4096 if vmem >= (128 << 20) else 2048


def _mlp_kernel(x_ref,
                w1_ref, b1_ref,
                w2_ref, b2_ref,
                w3_ref, b3_ref,
                w4_ref, b4_ref,
                o_ref):
    # x tile: (TB, 10) f32 -> bf16 for the MXU; accumulate in f32 (vector path stays f32).
    x = x_ref[...].astype(jnp.bfloat16)

    # fc1 + ReLU : (TB,10) @ (10,120) + (1,120)
    h1 = jnp.dot(x, w1_ref[...], preferred_element_type=jnp.float32) + b1_ref[...]
    h1 = jnp.maximum(h1, 0.0)

    # fc2 + ReLU : (TB,120) @ (120,84) + (1,84)
    h2 = jnp.dot(h1.astype(jnp.bfloat16), w2_ref[...],
                 preferred_element_type=jnp.float32) + b2_ref[...]
    h2 = jnp.maximum(h2, 0.0)

    # fc3 + ReLU : (TB,84) @ (84,10) + (1,10)
    h3 = jnp.dot(h2.astype(jnp.bfloat16), w3_ref[...],
                 preferred_element_type=jnp.float32) + b3_ref[...]
    h3 = jnp.maximum(h3, 0.0)

    # fc4 (out_features=1): VPU multiply + XLU lane reduction (no degenerate N=1 MXU matmul).
    # b4 is an SMEM scalar.  Result is written lane-major as a (1, TB) row so output stores
    # are 128-lane-wide instead of 1-lane masked stores.
    out = jnp.sum(h3 * w4_ref[...], axis=-1) + b4_ref[0]        # (TB,)
    o_ref[...] = out.reshape(1, -1).astype(o_ref.dtype)         # (1, TB), lane-dense


def regression_net_forward(x, params, *, tile_b=None):
    """x: (B, 10) float32. params: dict of w_i (in, out) and b_i (1, out), f32."""
    B, feat = x.shape
    assert feat == 10
    if tile_b is None:
        tile_b = _default_tile_b()

    # Weights feeding the MXU pre-cast to bf16 once (VMEM-resident for the whole call).
    w1 = params["w1"].astype(jnp.bfloat16)
    w2 = params["w2"].astype(jnp.bfloat16)
    w3 = params["w3"].astype(jnp.bfloat16)
    w4 = params["w4"].reshape(1, 10).astype(jnp.float32)   # fc4 stays f32 on the VPU
    b1, b2, b3 = params["b1"], params["b2"], params["b3"]
    b4 = params["b4"].reshape(1).astype(jnp.float32)       # SMEM scalar

    # Tile selection:
    #   * n_steps >= ceil(B / tile_b), and >= 2 when B >= 16 so both v7x TensorCores get a
    #     "parallel" grid step.
    #   * tb = round_up(ceil(B / n_steps), 8): padding waste < 8 rows per step, tb stays a
    #     sublane multiple for the (tb, 10) input block.
    n_steps = max(_cdiv(B, tile_b), 2 if B >= 16 else 1)
    tb = _round_up(_cdiv(B, n_steps), 8)
    pad_b = n_steps * tb
    x_p = jnp.pad(x, ((0, pad_b - B), (0, 0))) if pad_b != B else x

    # Constant index_map => array DMA'd once and pinned in VMEM across all grid steps.
    def resident(a):
        return pl.BlockSpec(a.shape, lambda i: (0,) * a.ndim)

    n_param_bytes = sum(int(a.size) * a.dtype.itemsize
                        for a in (w1, b1, w2, b2, w3, b3, w4, b4))
    cost = pl.CostEstimate(
        flops=2 * pad_b * (10 * 120 + 120 * 84 + 84 * 10 + 10),
        transcendentals=0,
        bytes_accessed=pad_b * (10 * 4 + 4) + n_param_bytes)

    out2d = pl.pallas_call(
        _mlp_kernel,
        out_shape=jax.ShapeDtypeStruct((n_steps, tb), jnp.float32),
        grid=(n_steps,),
        in_specs=[pl.BlockSpec((tb, 10), lambda i: (i, 0)),
                  resident(w1), resident(b1),
                  resident(w2), resident(b2),
                  resident(w3), resident(b3),
                  resident(w4),
                  pl.BlockSpec(memory_space=pltpu.MemorySpace.SMEM)],
        out_specs=pl.BlockSpec((1, tb), lambda i: (i, 0)),
        compiler_params=pltpu.CompilerParams(
            dimension_semantics=("parallel",),
            vmem_limit_bytes=48 * 1024 * 1024),
        cost_estimate=cost,
    )(x_p, w1, b1, w2, b2, w3, b3, w4, b4)

    out = out2d.reshape(pad_b)[:B]
    return out.reshape(B, 1)


def init_params(key):
    """Deterministic init mimicking PyTorch nn.Linear default
    (uniform(-1/sqrt(fan_in), 1/sqrt(fan_in)) for weight and bias)."""
    dims = [(10, 120), (120, 84), (84, 10), (10, 1)]
    params = {}
    for i, (fin, fout) in enumerate(dims, start=1):
        key, kw, kb = jax.random.split(key, 3)
        bound = 1.0 / math.sqrt(fin)
        # stored as (in, out) so the kernel computes x @ W (no transpose inside the kernel)
        params[f"w{i}"] = jax.random.uniform(kw, (fin, fout), jnp.float32,
                                             minval=-bound, maxval=bound)
        params[f"b{i}"] = jax.random.uniform(kb, (1, fout), jnp.float32,
                                             minval=-bound, maxval=bound)
    return params


def reference_forward_f32(x, params):
    h = jnp.maximum(x @ params["w1"] + params["b1"], 0.0)
    h = jnp.maximum(h @ params["w2"] + params["b2"], 0.0)
    h = jnp.maximum(h @ params["w3"] + params["b3"], 0.0)
    return h @ params["w4"] + params["b4"]


def reference_forward_bf16(x, params):
    """Mirrors the kernel's numerics: bf16 MXU operands, f32 accumulation/epilogue."""
    bf, f32 = jnp.bfloat16, jnp.float32
    h = jnp.maximum(jnp.dot(x.astype(bf), params["w1"].astype(bf),
                            preferred_element_type=f32) + params["b1"], 0.0)
    h = jnp.maximum(jnp.dot(h.astype(bf), params["w2"].astype(bf),
                            preferred_element_type=f32) + params["b2"], 0.0)
    h = jnp.maximum(jnp.dot(h.astype(bf), params["w3"].astype(bf),
                            preferred_element_type=f32) + params["b3"], 0.0)
    return jnp.sum(h * params["w4"].reshape(1, 10), axis=-1,
                   keepdims=True) + params["b4"]


if __name__ == "__main__":
    key = jax.random.PRNGKey(0)
    kx, kp = jax.random.split(key)
    params = init_params(kp)

    # Small single-tile case.
    B = 8
    x = jax.random.normal(kx, (B, 10), jnp.float32)
    out = jax.block_until_ready(regression_net_forward(x, params))
    assert out.shape == (B, 1), out.shape
    assert jnp.allclose(out, reference_forward_bf16(x, params),
                        atol=1e-3, rtol=1e-3), "mismatch vs bf16-operand reference"
    assert jnp.allclose(out, reference_forward_f32(x, params),
                        atol=5e-2, rtol=5e-2), "mismatch vs f32 reference"

    # Ragged multi-tile case: exercises batch padding, >=2 parallel grid steps, and the
    # lane-dense (1, tb) output blocks with n_steps > 1.
    B2 = 37
    x2 = jax.random.normal(jax.random.PRNGKey(1), (B2, 10), jnp.float32)
    out2 = jax.block_until_ready(regression_net_forward(x2, params, tile_b=16))
    assert out2.shape == (B2, 1), out2.shape
    assert jnp.allclose(out2, reference_forward_bf16(x2, params),
                        atol=1e-3, rtol=1e-3), "mismatch vs bf16-operand reference (tiled)"

    # Medium case on the default (generation-aware) tile: exercises the waste-minimizing
    # tile selection (n_steps=2, tb=152, <8 padded rows per step).
    B3 = 300
    x3 = jax.random.normal(jax.random.PRNGKey(2), (B3, 10), jnp.float32)
    out3 = jax.block_until_ready(regression_net_forward(x3, params))
    assert out3.shape == (B3, 1), out3.shape
    assert jnp.allclose(out3, reference_forward_bf16(x3, params),
                        atol=1e-3, rtol=1e-3), "mismatch vs bf16-operand reference (default tile)"

    print("KERNEL_OK")
</pallas_src>

<mosaic_0001>
module attributes {stable_mosaic.version = 11 : i64} {
  func.func @_mlp_kernel(%arg0: i32, %arg1: memref<8x10xf32, #tpu.memory_space<vmem>>, %arg2: memref<10x120xbf16, #tpu.memory_space<vmem>>, %arg3: memref<1x120xf32, #tpu.memory_space<vmem>>, %arg4: memref<120x84xbf16, #tpu.memory_space<vmem>>, %arg5: memref<1x84xf32, #tpu.memory_space<vmem>>, %arg6: memref<84x10xbf16, #tpu.memory_space<vmem>>, %arg7: memref<1x10xf32, #tpu.memory_space<vmem>>, %arg8: memref<1x10xf32, #tpu.memory_space<vmem>>, %arg9: memref<1xf32, #tpu.memory_space<smem>>, %arg10: memref<1x8xf32, #tpu.memory_space<vmem>>) attributes {dimension_semantics = [#tpu.dimension_semantics<parallel>], iteration_bounds = array<i64: 1>, scalar_prefetch = 0 : i64, scratch_operands = 0 : i64, tpu.core_type = #tpu.core_type<tc>, window_params = [{transform_indices = @transform_0, window_bounds = array<i64: 8, 10>}, {pipeline_mode = #tpu.pipeline_mode<synchronous>, transform_indices = @transform_1, window_bounds = array<i64: 10, 120>}, {pipeline_mode = #tpu.pipeline_mode<synchronous>, transform_indices = @transform_2, window_bounds = array<i64: 1, 120>}, {pipeline_mode = #tpu.pipeline_mode<synchronous>, transform_indices = @transform_3, window_bounds = array<i64: 120, 84>}, {pipeline_mode = #tpu.pipeline_mode<synchronous>, transform_indices = @transform_4, window_bounds = array<i64: 1, 84>}, {pipeline_mode = #tpu.pipeline_mode<synchronous>, transform_indices = @transform_5, window_bounds = array<i64: 84, 10>}, {pipeline_mode = #tpu.pipeline_mode<synchronous>, transform_indices = @transform_6, window_bounds = array<i64: 1, 10>}, {pipeline_mode = #tpu.pipeline_mode<synchronous>, transform_indices = @transform_7, window_bounds = array<i64: 1, 10>}, {transform_indices = @transform_8, window_bounds = array<i64: 1>}, {transform_indices = @transform_9, window_bounds = array<i64: 1, 8>}]} {
    %c0 = arith.constant 0 : index
    %c0_0 = arith.constant 0 : index
    %0 = vector.load %arg1[%c0, %c0_0] : memref<8x10xf32, #tpu.memory_space<vmem>>, vector<8x10xf32>
    %1 = arith.truncf %0 : vector<8x10xf32> to vector<8x10xbf16>
    %c0_1 = arith.constant 0 : index
    %c0_2 = arith.constant 0 : index
    %2 = vector.load %arg2[%c0_1, %c0_2] : memref<10x120xbf16, #tpu.memory_space<vmem>>, vector<10x120xbf16>
    %cst = arith.constant dense<0.000000e+00> : vector<8x120xf32>
    %3 = tpu.matmul %1, %2, %cst {dimension_numbers = #tpu.dot_dimension_numbers<[1], [0], [0], [1], [0, 0, 1, 1], [], []>} : vector<8x10xbf16>, vector<10x120xbf16>, vector<8x120xf32> -> vector<8x120xf32>
    %c0_3 = arith.constant 0 : index
    %c0_4 = arith.constant 0 : index
    %4 = vector.load %arg3[%c0_3, %c0_4] : memref<1x120xf32, #tpu.memory_space<vmem>>, vector<1x120xf32>
    %5 = vector.broadcast %4 : vector<1x120xf32> to vector<8x120xf32>
    %6 = arith.addf %3, %5 : vector<8x120xf32>
    %cst_5 = arith.constant 0.000000e+00 : f32
    %7 = vector.broadcast %cst_5 : f32 to vector<8x120xf32>
    %8 = arith.maximumf %6, %7 : vector<8x120xf32>
    %9 = arith.truncf %8 : vector<8x120xf32> to vector<8x120xbf16>
    %c0_6 = arith.constant 0 : index
    %c0_7 = arith.constant 0 : index
    %10 = vector.load %arg4[%c0_6, %c0_7] : memref<120x84xbf16, #tpu.memory_space<vmem>>, vector<120x84xbf16>
    %cst_8 = arith.constant dense<0.000000e+00> : vector<8x84xf32>
    %11 = tpu.matmul %9, %10, %cst_8 {dimension_numbers = #tpu.dot_dimension_numbers<[1], [0], [0], [1], [0, 0, 1, 1], [], []>} : vector<8x120xbf16>, vector<120x84xbf16>, vector<8x84xf32> -> vector<8x84xf32>
    %c0_9 = arith.constant 0 : index
    %c0_10 = arith.constant 0 : index
    %12 = vector.load %arg5[%c0_9, %c0_10] : memref<1x84xf32, #tpu.memory_space<vmem>>, vector<1x84xf32>
    %13 = vector.broadcast %12 : vector<1x84xf32> to vector<8x84xf32>
    %14 = arith.addf %11, %13 : vector<8x84xf32>
    %cst_11 = arith.constant 0.000000e+00 : f32
    %15 = vector.broadcast %cst_11 : f32 to vector<8x84xf32>
    %16 = arith.maximumf %14, %15 : vector<8x84xf32>
    %17 = arith.truncf %16 : vector<8x84xf32> to vector<8x84xbf16>
    %c0_12 = arith.constant 0 : index
    %c0_13 = arith.constant 0 : index
    %18 = vector.load %arg6[%c0_12, %c0_13] : memref<84x10xbf16, #tpu.memory_space<vmem>>, vector<84x10xbf16>
    %cst_14 = arith.constant dense<0.000000e+00> : vector<8x10xf32>
    %19 = tpu.matmul %17, %18, %cst_14 {dimension_numbers = #tpu.dot_dimension_numbers<[1], [0], [0], [1], [0, 0, 1, 1], [], []>} : vector<8x84xbf16>, vector<84x10xbf16>, vector<8x10xf32> -> vector<8x10xf32>
    %c0_15 = arith.constant 0 : index
    %c0_16 = arith.constant 0 : index
    %20 = vector.load %arg7[%c0_15, %c0_16] : memref<1x10xf32, #tpu.memory_space<vmem>>, vector<1x10xf32>
    %21 = vector.broadcast %20 : vector<1x10xf32> to vector<8x10xf32>
    %22 = arith.addf %19, %21 : vector<8x10xf32>
    %cst_17 = arith.constant 0.000000e+00 : f32
    %23 = vector.broadcast %cst_17 : f32 to vector<8x10xf32>
    %24 = arith.maximumf %22, %23 : vector<8x10xf32>
    %c0_18 = arith.constant 0 : index
    %c0_19 = arith.constant 0 : index
    %25 = vector.load %arg8[%c0_18, %c0_19] : memref<1x10xf32, #tpu.memory_space<vmem>>, vector<1x10xf32>
    %26 = vector.broadcast %25 : vector<1x10xf32> to vector<8x10xf32>
    %27 = arith.mulf %24, %26 : vector<8x10xf32>
    %cst_20 = arith.constant dense<0.000000e+00> : vector<8xf32>
    %28 = vector.multi_reduction <add>, %27, %cst_20 [1] : vector<8x10xf32> to vector<8xf32>
    %c0_21 = arith.constant 0 : index
    %29 = memref.load %arg9[%c0_21] : memref<1xf32, #tpu.memory_space<smem>>
    %30 = vector.broadcast %29 : f32 to vector<8xf32>
    %31 = arith.addf %28, %30 : vector<8xf32>
    %32 = vector.shape_cast %31 : vector<8xf32> to vector<1x8xf32>
    %c0_22 = arith.constant 0 : index
    %c0_23 = arith.constant 0 : index
    %33 = vector.load %arg10[%c0_22, %c0_23] : memref<1x8xf32, #tpu.memory_space<vmem>>, vector<1x8xf32>
    tpu.vector_store %arg10[%c0_22, %c0_23], %32 {strides = array<i32>} : memref<1x8xf32, #tpu.memory_space<vmem>>, vector<1x8xf32>,
    return
  }
  func.func @transform_0(%arg0: i32) -> (i32, i32) {
    %c0_i32 = arith.constant 0 : i32
    %c0_i32_0 = arith.constant 0 : i32
    return %arg0, %c0_i32 : i32, i32
  }
  func.func @transform_1(%arg0: i32) -> (i32, i32) {
    %c0_i32 = arith.constant 0 : i32
    %c0_i32_0 = arith.constant 0 : i32
    %c0_i32_1 = arith.constant 0 : i32
    return %c0_i32, %c0_i32_0 : i32, i32
  }
  func.func @transform_2(%arg0: i32) -> (i32, i32) {
    %c0_i32 = arith.constant 0 : i32
    %c0_i32_0 = arith.constant 0 : i32
    %c0_i32_1 = arith.constant 0 : i32
    return %c0_i32, %c0_i32_0 : i32, i32
  }
  func.func @transform_3(%arg0: i32) -> (i32, i32) {
    %c0_i32 = arith.constant 0 : i32
    %c0_i32_0 = arith.constant 0 : i32
    %c0_i32_1 = arith.constant 0 : i32
    return %c0_i32, %c0_i32_0 : i32, i32
  }
  func.func @transform_4(%arg0: i32) -> (i32, i32) {
    %c0_i32 = arith.constant 0 : i32
    %c0_i32_0 = arith.constant 0 : i32
    %c0_i32_1 = arith.constant 0 : i32
    return %c0_i32, %c0_i32_0 : i32, i32
  }
  func.func @transform_5(%arg0: i32) -> (i32, i32) {
    %c0_i32 = arith.constant 0 : i32
    %c0_i32_0 = arith.constant 0 : i32
    %c0_i32_1 = arith.constant 0 : i32
    return %c0_i32, %c0_i32_0 : i32, i32
  }
  func.func @transform_6(%arg0: i32) -> (i32, i32) {
    %c0_i32 = arith.constant 0 : i32
    %c0_i32_0 = arith.constant 0 : i32
    %c0_i32_1 = arith.constant 0 : i32
    return %c0_i32, %c0_i32_0 : i32, i32
  }
  func.func @transform_7(%arg0: i32) -> (i32, i32) {
    %c0_i32 = arith.constant 0 : i32
    %c0_i32_0 = arith.constant 0 : i32
    %c0_i32_1 = arith.constant 0 : i32
    return %c0_i32, %c0_i32_0 : i32, i32
  }
  func.func @transform_8(%arg0: i32) -> i32 {
    %c0_i32 = arith.constant 0 : i32
    %c0_i32_0 = arith.constant 0 : i32
    return %c0_i32 : i32
  }
  func.func @transform_9(%arg0: i32) -> (i32, i32) {
    %c0_i32 = arith.constant 0 : i32
    %c0_i32_0 = arith.constant 0 : i32
    return %arg0, %c0_i32 : i32, i32
  }
}

</mosaic_0001>

<bundles_post_ra>
// kernel: tpu_custom_call.1
= control target key start
LH: loop header
LB: loop body
LE: loop exit
PB: predicated region body
PF: predicated region fallthrough
CT: control target
= control target key end

     0   :  { %vm55_vm0 = vcmask 1044480   ;;  %v480_v0 = vmov 0.0   ;;  %vm481_vm1 = vmmov 0   ;;  %vm51_vm2 = vcmask 80896   ;;  %s628_s0 = inlined_call_operand.vmem [shape: f32[8,10], index: 0, kind: input, shape index: {}]   ;;  %s629_s1 = inlined_call_operand.vmem [shape: bf16[10,120], index: 1, kind: input, shape index: {}]   ;;  %s630_s2 = inlined_call_operand.vmem [shape: f32[1,120], index: 2, kind: input, shape index: {}]   ;;  %s631_s3 = inlined_call_operand.vmem [shape: bf16[120,84], index: 3, kind: input, shape index: {}]   ;;  %s632_s4 = inlined_call_operand.vmem [shape: f32[1,84], index: 4, kind: input, shape index: {}]   ;;  %s633_s5 = inlined_call_operand.vmem [shape: bf16[84,10], index: 5, kind: input, shape index: {}]   ;;  %s634_s6 = inlined_call_operand.vmem [shape: f32[1,10], index: 6, kind: input, shape index: {}]   ;;  %s635_s7 = inlined_call_operand.vmem [shape: f32[1,10], index: 7, kind: input, shape index: {}]   ;;  %s636_s8 = inlined_call_operand.<no memory space> [shape: f32[1], index: 8, kind: input, shape index: {}]   ;;  %s637_s9 = inlined_call_operand.hbm [shape: f32[1,8], index: 9, kind: output, shape index: {}]  }
   0x1   :  { %396 = vmatprep.subr.bf16.mxu0 %v480_v0  ;;  %v441_v1 = vld [vmem:[%s629_s1] sm:$0x1f]   ;;  %402 = vmatprep.subr.bf16.mxu1 %v480_v0  ;;  %v443_v6 = vld [vmem:[%s631_s3 + $0x8] sm:$0xff]   ;;  %v444_v7 = vld [vmem:[%s631_s3 + $0x10] sm:$0xff]  }
   0x2   :  { %v35_v2 = vld [vmem:[%s628_s0] sm:$0xff]  ;;  %398 = vmatprep.mubr.msk.bf16.mxu0 %vm481_vm1, %v480_v0  ;;  %418 = vmatprep.mubr.msk.bf16.mxu1 %vm481_vm1, %v480_v0  ;;  %v57_v4 = vsel %vm55_vm0, %v441_v1, 0  ;;  %v445_v8 = vld [vmem:[%s631_s3 + $0x18] sm:$0xff]  }
   0x3   :  { %v442_v3 = vld [vmem:[%s631_s3] sm:$0xff]   ;;  %v36_v5 = vpack.c.bf16 %v35_v2, %v35_v2  ;;  %397 = vmatpush3.bf16.msra.mxu0 %v57_v4 }
   0x4   :  { %403 = vmatpush3.bf16.msra.mxu1 %v442_v3  ;;  %422 = vmatprep.subr.bf16.mxu0 %v480_v0 }
   0x5   :  { %404 = vmatprep.subr.bf16.mxu1 %v480_v0 }
   0x6   :  { %399 = vmatmul.mubr.msk.bf16.vlgmr.msra.gmra.mrb[0].mxu0 %vm51_vm2, %v36_v5 }
   0x7   :  { %434 = vmatprep.mubr.msk.bf16.mxu0 %vm481_vm1, %v480_v0 }
   0x8   :  { %405 = vmatpush3.bf16.msra.mxu1 %v443_v6 }
   0x9   :  { %406 = vmatprep.subr.bf16.mxu1 %v480_v0 }
   0xc   :  { %407 = vmatpush3.bf16.msra.mxu1 %v444_v7 }
   0xd   :  { %408 = vmatprep.subr.bf16.mxu1 %v480_v0 }
   0xe   :  { %15 = vsyncpa [#allocation4], 0  ;;  %v446_v9 = vld [vmem:[%s631_s3 + $0x20] sm:$0xff]   ;;  %v447_v10 = vld [vmem:[%s631_s3 + $0x28] sm:$0xff]   ;;  %vm172_vm3 = vcmask 1043456   ;;  %vm168_vm4 = vcmask 982016   ;;  %v333_v47 = vlaneseq  ;;  %v330_v50 = vstv %s636_s8 }
   0xf   :  { %v448_v11 = vld [vmem:[%s631_s3 + $0x30] sm:$0xff]   ;;  %v449_v12 = vld [vmem:[%s631_s3 + $0x38] ss:$0 sps:$4 sm:$0xff]   ;;  %v450_v14 = vld [vmem:[%s633_s5] sm:$0xff]   ;;  %vm273_vm5 = vcmask 1041408   ;;  %vm269_vm6 = vcmask 687104  }
  0x10   :  { %409 = vmatpush3.bf16.msra.mxu1 %v445_v8  ;;  %v174_v13 = vsel %vm172_vm3, %v449_v12, 0  ;;  %423 = vmatpush3.bf16.msra.mxu0 %v450_v14  ;;  %v451_v15 = vld [vmem:[%s633_s5 + $0x8] sm:$0xff]   ;;  %v452_v16 = vld [vmem:[%s633_s5 + $0x10] sm:$0xff]   ;;  %v453_v17 = vld [vmem:[%s633_s5 + $0x18] sm:$0xff]   ;;  %v334_v48 = vand.u32 127, %v333_v47  ;;  %v336_v49 = vshrl.u32 %v333_v47, 7 }
  0x11   :  { %410 = vmatprep.subr.bf16.mxu1 %v480_v0  ;;  %424 = vmatprep.subr.bf16.mxu0 %v480_v0  ;;  %v356_v18 = vld [vmem:[%s630_s2] ss:$0 sm:$0xff]  ;;  %v455_v27 = vld [vmem:[%s633_s5 + $0x28] ss:$0 sps:$4 sm:$0x33]   ;;  %vm340_vm7 = vcmask 57344  }
  0x12   :  { %v454_v26 = vld [vmem:[%s633_s5 + $0x20] sm:$0xff]   ;;  %v275_v28 = vsel %vm273_vm5, %v455_v27, 0  ;;  %v337_v51 = vsub.s32 %v334_v48, %v336_v49 }
  0x13   :  { %v359_v29 = vld [vmem:[%s632_s4] ss:$0 sm:$0xff] }
  0x14   :  { %411 = vmatpush3.bf16.msra.mxu1 %v446_v9  ;;  %425 = vmatpush3.bf16.msra.mxu0 %v451_v15  ;;  %v369_v37 = vld [vmem:[%s634_s6] ss:$0 sm:$0xff]  ;;  %s482_s6 = smov [#allocation3]  }
  0x15   :  { %412 = vmatprep.subr.bf16.mxu1 %v480_v0  ;;  %426 = vmatprep.subr.bf16.mxu0 %v480_v0  ;;  %v377_v42 = vld [vmem:[%s635_s7] ss:$0 sm:$0xff]  ;;  %s348_s22 = sshll.u32 %s482_s6, 4  ;;  %s349_s22 = int_to_ptr.vmem [resolvable:$true] %s348_s22 }
  0x16   :  { %s456_s7 = scalar_lea.vmem %s349_s22, 16  ;;  %s460_s23 = scalar_lea.vmem %s349_s22, 32 }
  0x17   :  { %p457_p0 = scmp.ne.s32.totalorder %s349_s22, %s456_s7  ;;  %p461_p1 = scmp.lt.s32.totalorder %s349_s22, %s349_s22 }
  0x18   :  { %413 = vmatpush3.bf16.msra.mxu1 %v447_v10  ;;  %427 = vmatpush3.bf16.msra.mxu0 %v452_v16  ;;  %p462_p2 = scmp.lt.s32.totalorder %s460_s23, %s456_s7 }
  0x19   :  { %414 = vmatprep.subr.bf16.mxu1 %v480_v0  ;;  %428 = vmatprep.subr.bf16.mxu0 %v480_v0 }
  0x1a   :  { %p463_p3 = por %p462_p2, %p461_p1 }
  0x1c   :  { %415 = vmatpush3.bf16.msra.mxu1 %v448_v11  ;;  %429 = vmatpush3.bf16.msra.mxu0 %v453_v17  ;;  %p464_p4 = pnand %p463_p3, %p457_p0 }
  0x1d   :  { %416 = vmatprep.subr.bf16.mxu1 %v480_v0  ;;  %430 = vmatprep.subr.bf16.mxu0 %v480_v0 }
  0x20   :  { %417 = vmatpush3.bf16.msra.mxu1 %v174_v13  ;;  %431 = vmatpush3.bf16.msra.mxu0 %v454_v26 }
  0x21   :  { %432 = vmatprep.subr.bf16.mxu0 %v480_v0 }
  0x24   :  { %433 = vmatpush3.bf16.msra.mxu0 %v275_v28 }
  0xd9   :  { %v93_v19 = vpop.f32.mrb[0].mxu0 }
  0xda   :  { %v94_v20 = vadd.f32 %v356_v18, %v93_v19  ;;  %v400_v21 = vpop.f32.mrb[1].mxu0 }
  0xdb   :  { %v96_v22 = vpop.f32.mrb[2].mxu0 }
  0xdc   :  { %v99_v23 = vmax.f32 %v94_v20, 0.0  ;;  %v401_v24 = vpop.f32.mrb[3].mxu0 }
  0xde   :  { %v100_v25 = vpack.c.bf16 %v99_v23, %v99_v23 }
  0xe0   :  { %419 = vmatmul.mubr.msk.bf16.vlgmr.msra.gmra.mrb[0].mxu1 %vm168_vm4, %v100_v25 }
 0x1b3   :  { %v210_v30 = vpop.f32.mrb[0].mxu1 }
 0x1b4   :  { %v211_v31 = vadd.f32 %v359_v29, %v210_v30  ;;  %v420_v32 = vpop.f32.mrb[1].mxu1 }
 0x1b5   :  { %v213_v33 = vpop.f32.mrb[2].mxu1 }
 0x1b6   :  { %v216_v34 = vmax.f32 %v211_v31, 0.0  ;;  %v421_v35 = vpop.f32.mrb[3].mxu1 }
 0x1b8   :  { %v217_v36 = vpack.c.bf16 %v216_v34, %v216_v34 }
 0x1ba   :  { %435 = vmatmul.mubr.msk.bf16.vlgmr.msra.gmra.mrb[4].mxu0 %vm269_vm6, %v217_v36 }
 0x28d   :  { %v311_v38 = vpop.f32.mrb[4].mxu0 }
 0x28e   :  { %v312_v39 = vadd.f32 %v369_v37, %v311_v38  ;;  %v436_v40 = vpop.f32.mrb[5].mxu0 }
 0x28f   :  { %v314_v41 = vpop.f32.mrb[6].mxu0 }
 0x290   :  { %v317_v43 = vmax.f32 %v312_v39, 0.0  ;;  %v437_v44 = vpop.f32.mrb[7].mxu0 }
 0x292   :  { %v325_v45 = vmul.f32 %v377_v42, %v317_v43 }
 0x294   :  { %v326_v46 = vsel %vm51_vm2, %v325_v45, 0.0 }
 0x295   :  { %327 = vadd.xlane.f32.xlu0 %v326_v46 }
 0x322   :  { %v328_v52 = vpop.xlane.xlu0 %327 }
 0x323   :  { %v331_v53 = vadd.f32 %v330_v50, %v328_v52 }
 0x325   :  { %v338_v54 = vrot.slane %v331_v53, %v337_v51 }
 0x327   :  { %341 = vst.msk [vmem:[#allocation3] sm:$0x1] %vm340_vm7, %v338_v54 }
 0x328   :  { %467 = shalt.err (!%p464_p4)
}
 0x329   :  { %s468_s8 = scalar_lea.hbm %s637_s9, 16 }
 0x32a   :  { %p469_p5 = scmp.ne.s32.totalorder %s637_s9, %s468_s8  ;;  %p472_p6 = scmp.lt.u32.totalorder %s468_s8, %s637_s9 }
 0x32c   :  { %p474_p7 = pnand %p472_p6, %p469_p5 }
 0x32e   :  { %477 = shalt.err (!%p474_p7)
}
 0x32f   :  { %351 = dma.vmem_to_hbm [thread:$0]  %s349_s22, 16, %s637_s9, [#allocation4]  }
 0x330   :  { %478 = dma.done.wait [#allocation4], 16  }
 0x331   :  { %479 = vsyncadd [#allocation4], 4294967280 }
 0x332   :  { %355 = vsyncpa [#allocation4], 1 }

</bundles_post_ra>
